<compile_context>
chip_gen: v7x
topology: tpu7x:2x2x1
jax: 0.10.0
libtpu: 0.0.40
codegen_flags: <defaults>
</compile_context>

<pallas_src>
import functools

import jax
import jax.numpy as jnp
from jax import lax
from jax.experimental import pallas as pl
from jax.experimental.pallas import tpu as pltpu


def _round_up(v: int, m: int) -> int:
    return ((v + m - 1) // m) * m


def _vmem_capacity_bytes() -> int:
    try:
        cap = getattr(pltpu.get_tpu_info(), "vmem_capacity_bytes", None)
        if cap:
            return int(cap)
    except Exception:
        pass
    return 64 * 1024 * 1024  # conservative default (v7x per-core VMEM)


def _bf16_eup_ok() -> bool:
    # v5e (and older) has no bf16 EUP; keep exp in f32 there.
    try:
        kind = jax.devices()[0].device_kind.lower()
    except Exception:
        return False
    return not any(t in kind for t in ("v2", "v3", "v4", "v5 lite", "v5e", "v5lite"))


def _pick_tk(k_aligned: int) -> int:
    # Single resident mu block for the common (K <= ~1k classes) case;
    # otherwise stream mu in the largest <=512 lane-aligned block that
    # divides k_aligned (bounds VMEM on v7x's 64 MiB).
    if k_aligned <= 1024:
        return k_aligned
    tk = 128
    for cand in range(256, 513, 128):
        if k_aligned % cand == 0:
            tk = cand
    return tk


def _gaussian_kernel(x_ref, muw_ref, nhi_ref, mu2h_ref, out_ref, *,
                     no_exp: bool, exp_in_bf16: bool):
    x = x_ref[...]          # (tn, d_pad)  x.dtype (bf16 stays bf16 on the MXU)
    muw = muw_ref[...]      # (tk, d_pad)  x.dtype : mu0 / std
    nhi = nhi_ref[...]      # (1, d_pad)   x.dtype : -0.5 / std (0 on padding)
    mu2h = mu2h_ref[...]    # (1, tk)      f32     : -0.5 * sum(mu0^2 / std)

    # MXU: cross[n, k] = sum_d x[n, d] * mu[k, d] / std[d]
    # (contract dim 1 of both operands -> no transposed copy of mu).
    cross = lax.dot_general(x, muw, (((1,), (1,)), ((), ())),
                            preferred_element_type=jnp.float32)   # (tn, tk)
    # MXU (tiny, <1% extra flops): x2h[n] = -0.5 * sum_d x[n, d]^2 / std[d]
    x2h = lax.dot_general(x * x, nhi, (((1,), (1,)), ((), ())),
                          preferred_element_type=jnp.float32)     # (tn, 1)

    quad = cross + x2h + mu2h                                     # (tn, tk) f32
    if no_exp:
        out_ref[...] = quad.astype(out_ref.dtype)
    elif exp_in_bf16:
        # bf16 EUP path (v6e/v7x): half the EUP element work; accuracy is
        # already bounded by the bf16 output cast.
        out_ref[...] = jnp.exp(quad.astype(jnp.bfloat16)).astype(out_ref.dtype)
    else:
        out_ref[...] = jnp.exp(quad).astype(out_ref.dtype)


def gaussian_forward(x, mu, std, *, no_exp=False, get_components=False):
    """Pallas equivalent of Gaussian.forward.

    x  : (N, d);  mu : (K, num_components, d);  std : (d,)
    Returns (N, K) — or (N, 1, K) of ones when get_components=True.
    """
    N, d = x.shape
    K = mu.shape[0]
    out_dtype = x.dtype

    if get_components:
        # torch.ones_like(intermediate.unsqueeze(1)) — no kernel needed.
        return jnp.ones((N, 1, K), dtype=out_dtype)

    es_x = jnp.dtype(x.dtype).itemsize
    es_out = jnp.dtype(out_dtype).itemsize
    row_align = 16 if es_x == 2 else 8

    d_pad = _round_up(d, 128)              # full lane utilization
    k_aligned = _round_up(K, 128)          # lane-dense output stores
    tk = _pick_tk(k_aligned)
    k_pad = _round_up(k_aligned, tk)

    # ---- per-generation tile sizing --------------------------------------
    cap = _vmem_capacity_bytes()
    budget = (44 << 20) if cap <= (64 << 20) else (96 << 20)

    def tile_bytes(tn_):
        return (2 * tn_ * d_pad * es_x           # x (double-buffered)
                + 2 * tk * d_pad * es_x          # mu0/std block
                + 2 * tn_ * tk * es_out          # output block
                + 2 * d_pad * es_x + 2 * tk * 4)  # tiny constant rows

    tn = 128
    for cand in (2048, 1792, 1536, 1280, 1024, 768, 512, 384, 256, 128):
        if tile_bytes(cand) <= budget:
            tn = cand
            break
    tn = min(tn, _round_up(N, row_align))
    tn = max(row_align, _round_up(tn, row_align))
    n_pad = _round_up(N, tn)

    vmem_limit = int(min(cap, max(tile_bytes(tn) + (16 << 20), 32 << 20)))

    # ---- host-side constants (computed once, in f32) ---------------------
    mu0 = mu[:, 0, :].astype(jnp.float32)                        # (K, d)
    inv = 1.0 / std.astype(jnp.float32)                          # (d,)
    muw = (mu0 * inv[None, :]).astype(x.dtype)                   # (K, d)
    mu2h = -0.5 * jnp.sum(mu0 * mu0 * inv[None, :], axis=-1)     # (K,)  f32
    nhi = (-0.5 * inv).astype(x.dtype)                           # (d,)

    # Small per-class constants: padding them is O(K*d), negligible vs x.
    muw_p = muw if (k_pad == K and d_pad == d) else (
        jnp.zeros((k_pad, d_pad), x.dtype).at[:K, :d].set(muw))
    nhi_p = jnp.zeros((1, d_pad), x.dtype).at[0, :d].set(nhi)
    mu2h_p = jnp.zeros((1, k_pad), jnp.float32).at[0, :K].set(mu2h)

    # x is only copied when not already tile-aligned (CLIP dims 512/768/1024
    # with N % tn == 0 skip this entirely -> no extra HBM pass).
    if n_pad == N and d_pad == d:
        x_p = x
    else:
        x_p = jnp.zeros((n_pad, d_pad), x.dtype).at[:N, :d].set(x)

    exp_in_bf16 = (not no_exp) and out_dtype == jnp.bfloat16 and _bf16_eup_ok()
    kernel = functools.partial(_gaussian_kernel, no_exp=no_exp,
                               exp_in_bf16=exp_in_bf16)

    cost = pl.CostEstimate(
        flops=2 * n_pad * k_pad * d_pad + 2 * n_pad * d_pad * (k_pad // tk),
        transcendentals=0 if no_exp else n_pad * k_pad,
        bytes_accessed=(n_pad * d_pad * es_x + k_pad * d_pad * es_x
                        + n_pad * k_pad * es_out),
    )

    out = pl.pallas_call(
        kernel,
        out_shape=jax.ShapeDtypeStruct((n_pad, k_pad), out_dtype),
        grid_spec=pltpu.PrefetchScalarGridSpec(
            num_scalar_prefetch=0,
            grid=(n_pad // tn, k_pad // tk),
            in_specs=[
                pl.BlockSpec((tn, d_pad), lambda i, j: (i, 0)),   # x (resident over j)
                pl.BlockSpec((tk, d_pad), lambda i, j: (j, 0)),   # mu0/std block
                pl.BlockSpec((1, d_pad), lambda i, j: (0, 0)),    # -0.5/std row
                pl.BlockSpec((1, tk), lambda i, j: (0, j)),       # -0.5*sum(mu0^2/std)
            ],
            out_specs=pl.BlockSpec((tn, tk), lambda i, j: (i, j)),
        ),
        compiler_params=pltpu.CompilerParams(
            dimension_semantics=("parallel", "arbitrary"),
            vmem_limit_bytes=vmem_limit,
        ),
        cost_estimate=cost,
    )(x_p, muw_p, nhi_p, mu2h_p)

    if n_pad == N and k_pad == K:
        return out
    return out[:N, :K]


def gaussian_reference(x, mu, std, *, no_exp=False):
    diff = x[:, None, :].astype(jnp.float32) - mu[None, :, 0, :].astype(jnp.float32)
    inter = -0.5 * jnp.sum(diff * diff / std.astype(jnp.float32)[None, None, :], axis=-1)
    if not no_exp:
        inter = jnp.exp(inter)
    return inter


if __name__ == "__main__":
    key = jax.random.PRNGKey(0)
    k1, k2, k3, k4, k5, k6, k7, k8, k9 = jax.random.split(key, 9)

    # Small module-consistent shapes: K classes, num_components, d features.
    N, K, num_components, d = 16, 4, 3, 32
    mu = jax.random.normal(k1, (K, num_components, d), dtype=jnp.float32)
    std = jax.random.uniform(k2, (d,), dtype=jnp.float32, minval=0.5, maxval=2.0)
    x = jax.random.normal(k3, (N, d), dtype=jnp.float32)

    out = jax.block_until_ready(gaussian_forward(x, mu, std))
    ref = gaussian_reference(x, mu, std)
    assert out.shape == (N, K)
    assert jnp.allclose(out, ref, atol=1e-5, rtol=1e-4), "mismatch (exp)"

    out_ne = jax.block_until_ready(gaussian_forward(x, mu, std, no_exp=True))
    ref_ne = gaussian_reference(x, mu, std, no_exp=True)
    assert jnp.allclose(out_ne, ref_ne, atol=1e-3, rtol=1e-4), "mismatch (no_exp)"

    comp = gaussian_forward(x, mu, std, get_components=True)
    assert comp.shape == (N, 1, K) and bool(jnp.all(comp == 1.0))

    # Lane-aligned d (no x pad / no copy fast path).
    Na, Ka, da = 32, 4, 128
    mu_a = jax.random.normal(k7, (Ka, 1, da), dtype=jnp.float32)
    std_a = jax.random.uniform(k8, (da,), dtype=jnp.float32, minval=0.5, maxval=2.0)
    x_a = jax.random.normal(k9, (Na, da), dtype=jnp.float32)
    out_a = jax.block_until_ready(gaussian_forward(x_a, mu_a, std_a))
    ref_a = gaussian_reference(x_a, mu_a, std_a)
    assert out_a.shape == (Na, Ka)
    assert jnp.allclose(out_a, ref_a, atol=1e-5, rtol=1e-4), "mismatch (aligned)"

    # Ragged / padded shapes: exercises d/K lane padding and output slicing.
    N2, K2, d2 = 1040, 10, 160
    mu_b = jax.random.normal(k4, (K2, 1, d2), dtype=jnp.float32)
    std_b = jax.random.uniform(k5, (d2,), dtype=jnp.float32, minval=0.5, maxval=2.0)
    x_b = jax.random.normal(k6, (N2, d2), dtype=jnp.float32)
    out_b = jax.block_until_ready(gaussian_forward(x_b, mu_b, std_b))
    ref_b = gaussian_reference(x_b, mu_b, std_b)
    assert out_b.shape == (N2, K2)
    assert jnp.allclose(out_b, ref_b, atol=1e-4, rtol=1e-4), "mismatch (large exp)"
    out_bn = jax.block_until_ready(gaussian_forward(x_b, mu_b, std_b, no_exp=True))
    ref_bn = gaussian_reference(x_b, mu_b, std_b, no_exp=True)
    assert jnp.allclose(out_bn, ref_bn, atol=2e-3, rtol=2e-4), "mismatch (large no_exp)"

    # bf16 path: operands stay bf16 on the MXU (no f32 upcast). The expanded
    # quadratic form in bf16 loses cancellation precision vs the f32
    # reference, so only shape / dtype / finiteness are checked here.
    out_h = jax.block_until_ready(
        gaussian_forward(x.astype(jnp.bfloat16), mu.astype(jnp.bfloat16),
                         std.astype(jnp.bfloat16)))
    assert out_h.shape == (N, K) and out_h.dtype == jnp.bfloat16
    o32 = out_h.astype(jnp.float32)
    assert bool(jnp.all(jnp.isfinite(o32))) and bool(jnp.all(o32 >= 0.0))

    print("KERNEL_OK")
</pallas_src>

<mosaic_0001>
module attributes {stable_mosaic.version = 11 : i64} {
  func.func @_gaussian_kernel(%arg0: i32, %arg1: i32, %arg2: memref<16x128xf32, #tpu.memory_space<vmem>>, %arg3: memref<128x128xf32, #tpu.memory_space<vmem>>, %arg4: memref<1x128xf32, #tpu.memory_space<vmem>>, %arg5: memref<1x128xf32, #tpu.memory_space<vmem>>, %arg6: memref<16x128xf32, #tpu.memory_space<vmem>>) attributes {dimension_semantics = [#tpu.dimension_semantics<parallel>, #tpu.dimension_semantics<arbitrary>], iteration_bounds = array<i64: 1, 1>, scalar_prefetch = 0 : i64, scratch_operands = 0 : i64, tpu.core_type = #tpu.core_type<tc>, window_params = [{transform_indices = @transform_0, window_bounds = array<i64: 16, 128>}, {transform_indices = @transform_1, window_bounds = array<i64: 128, 128>}, {pipeline_mode = #tpu.pipeline_mode<synchronous>, transform_indices = @transform_2, window_bounds = array<i64: 1, 128>}, {transform_indices = @transform_3, window_bounds = array<i64: 1, 128>}, {transform_indices = @transform_4, window_bounds = array<i64: 16, 128>}]} {
    %c0 = arith.constant 0 : index
    %c0_0 = arith.constant 0 : index
    %0 = vector.load %arg2[%c0, %c0_0] : memref<16x128xf32, #tpu.memory_space<vmem>>, vector<16x128xf32>
    %c0_1 = arith.constant 0 : index
    %c0_2 = arith.constant 0 : index
    %1 = vector.load %arg3[%c0_1, %c0_2] : memref<128x128xf32, #tpu.memory_space<vmem>>, vector<128x128xf32>
    %c0_3 = arith.constant 0 : index
    %c0_4 = arith.constant 0 : index
    %2 = vector.load %arg4[%c0_3, %c0_4] : memref<1x128xf32, #tpu.memory_space<vmem>>, vector<1x128xf32>
    %c0_5 = arith.constant 0 : index
    %c0_6 = arith.constant 0 : index
    %3 = vector.load %arg5[%c0_5, %c0_6] : memref<1x128xf32, #tpu.memory_space<vmem>>, vector<1x128xf32>
    %cst = arith.constant dense<0.000000e+00> : vector<16x128xf32>
    %4 = tpu.matmul %0, %1, %cst {dimension_numbers = #tpu.dot_dimension_numbers<[1], [1], [0], [0], [0, 0, 1, 0], [], []>} : vector<16x128xf32>, vector<128x128xf32>, vector<16x128xf32> -> vector<16x128xf32>
    %5 = arith.mulf %0, %0 : vector<16x128xf32>
    %cst_7 = arith.constant dense<0.000000e+00> : vector<16x1xf32>
    %6 = tpu.matmul %5, %2, %cst_7 {dimension_numbers = #tpu.dot_dimension_numbers<[1], [1], [0], [0], [0, 0, 1, 0], [], []>} : vector<16x128xf32>, vector<1x128xf32>, vector<16x1xf32> -> vector<16x1xf32>
    %7 = vector.broadcast %6 : vector<16x1xf32> to vector<16x128xf32>
    %8 = arith.addf %4, %7 : vector<16x128xf32>
    %9 = vector.broadcast %3 : vector<1x128xf32> to vector<16x128xf32>
    %10 = arith.addf %8, %9 : vector<16x128xf32>
    %11 = math.exp %10 : vector<16x128xf32>
    %c0_8 = arith.constant 0 : index
    %c0_9 = arith.constant 0 : index
    %12 = vector.load %arg6[%c0_8, %c0_9] : memref<16x128xf32, #tpu.memory_space<vmem>>, vector<16x128xf32>
    tpu.vector_store %arg6[%c0_8, %c0_9], %11 {strides = array<i32>} : memref<16x128xf32, #tpu.memory_space<vmem>>, vector<16x128xf32>,
    return
  }
  func.func @transform_0(%arg0: i32, %arg1: i32) -> (i32, i32) {
    %c0_i32 = arith.constant 0 : i32
    %c0_i32_0 = arith.constant 0 : i32
    return %arg0, %c0_i32 : i32, i32
  }
  func.func @transform_1(%arg0: i32, %arg1: i32) -> (i32, i32) {
    %c0_i32 = arith.constant 0 : i32
    %c0_i32_0 = arith.constant 0 : i32
    return %arg1, %c0_i32 : i32, i32
  }
  func.func @transform_2(%arg0: i32, %arg1: i32) -> (i32, i32) {
    %c0_i32 = arith.constant 0 : i32
    %c0_i32_0 = arith.constant 0 : i32
    %c0_i32_1 = arith.constant 0 : i32
    return %c0_i32, %c0_i32_0 : i32, i32
  }
  func.func @transform_3(%arg0: i32, %arg1: i32) -> (i32, i32) {
    %c0_i32 = arith.constant 0 : i32
    %c0_i32_0 = arith.constant 0 : i32
    return %c0_i32, %arg1 : i32, i32
  }
  func.func @transform_4(%arg0: i32, %arg1: i32) -> (i32, i32) {
    %c0_i32 = arith.constant 0 : i32
    return %arg0, %arg1 : i32, i32
  }
}

</mosaic_0001>

<bundles_post_ra>
// kernel: tpu_custom_call.1
= control target key start
LH: loop header
LB: loop body
LE: loop exit
PB: predicated region body
PF: predicated region fallthrough
CT: control target
= control target key end

     0   :  { %9 = vsyncpa [#allocation3], 0  ;;  %s436_s0 = inlined_call_operand.hbm [shape: f32[16,128], index: 0, kind: input, shape index: {}]   ;;  %s437_s1 = inlined_call_operand.hbm [shape: f32[128,128], index: 1, kind: input, shape index: {}]   ;;  %s438_s2 = inlined_call_operand.vmem [shape: f32[1,128], index: 2, kind: input, shape index: {}]   ;;  %s439_s3 = inlined_call_operand.vmem [shape: f32[1,128], index: 3, kind: input, shape index: {}]   ;;  %s440_s4 = inlined_call_operand.hbm [shape: f32[16,128], index: 4, kind: output, shape index: {}]  }
   0x1   :  { %10 = vsyncpa [#allocation6], 0 }
   0x2   :  { %11 = vsyncpa [#allocation4], 0  ;;  %s355_s15 = smov [#allocation2]   ;;  %s283_s19 = scalar_lea.hbm %s436_s0, 256 }
   0x3   :  { %s17_s16 = sshll.u32 %s355_s15, 4  ;;  %p284_p0 = scmp.ne.s32.totalorder %s436_s0, %s283_s19  ;;  %s18_s16 = int_to_ptr.vmem [resolvable:$true] %s17_s16 }
   0x4   :  { %p287_p1 = scmp.lt.u32.totalorder %s283_s19, %s436_s0 }
   0x6   :  { %p289_p2 = pnand %p287_p1, %p284_p0 }
   0x8   :  { %292 = shalt.err (!%p289_p2)
}
   0x9   :  { %s293_s24 = scalar_lea.vmem %s18_s16, 256  ;;  %p298_p4 = scmp.lt.s32.totalorder %s18_s16, %s18_s16 }
   0xa   :  { %p294_p3 = scmp.ne.s32.totalorder %s18_s16, %s293_s24  ;;  %p299_p5 = scmp.lt.s32.totalorder %s293_s24, %s293_s24 }
   0xc   :  { %p300_p6 = por %p299_p5, %p298_p4 }
   0xe   :  { %p301_p7 = pnand %p300_p6, %p294_p3 }
  0x10   :  { %304 = shalt.err (!%p301_p7)
}
  0x11   :  { %s356_s25 = smov 128   ;;  %s357_s26 = smov 8  }
  0x12   :  { %23 = dma.hbm_to_vmem [thread:$0]  %s436_s0, 256, %s18_s16, [#allocation3], %s356_s25, %s356_s25, %s357_s26  }
  0x13   :  { %s358_s29 = smov [#allocation5]   ;;  %s305_s7 = scalar_lea.hbm %s437_s1, 2048 }
  0x14   :  { %s29_s30 = sshll.u32 %s358_s29, 4  ;;  %p306_p8 = scmp.ne.s32.totalorder %s437_s1, %s305_s7  ;;  %s30_s30 = int_to_ptr.vmem [resolvable:$true] %s29_s30 }
  0x15   :  { %p309_p9 = scmp.lt.u32.totalorder %s305_s7, %s437_s1 }
  0x17   :  { %p311_p10 = pnand %p309_p9, %p306_p8 }
  0x19   :  { %314 = shalt.err (!%p311_p10)
}
  0x1a   :  { %s315_s12 = scalar_lea.vmem %s30_s30, 2048  ;;  %p320_p12 = scmp.lt.s32.totalorder %s30_s30, %s30_s30 }
  0x1b   :  { %p316_p11 = scmp.ne.s32.totalorder %s30_s30, %s315_s12  ;;  %p321_p13 = scmp.lt.s32.totalorder %s315_s12, %s315_s12 }
  0x1d   :  { %p322_p0 = por %p321_p13, %p320_p12 }
  0x1f   :  { %p323_p1 = pnand %p322_p0, %p316_p11 }
  0x21   :  { %326 = shalt.err (!%p323_p1)
}
  0x22   :  { %35 = dma.hbm_to_vmem [thread:$0]  %s437_s1, 2048, %s30_s30, [#allocation6], %s356_s25, %s356_s25, %s357_s26  }
  0x23   :  { %349 = dma.done.wait [#allocation3], 256  }
  0x24   :  { %350 = vsyncadd [#allocation3], 4294967040 }
  0x25   :  { %351 = dma.done.wait [#allocation6], 2048  }
  0x26   :  { %352 = vsyncadd [#allocation6], 4294965248  ;;  %v48_v0 = vld [vmem:[#allocation5] sm:$0xff]  ;;  %v49_v1 = vld [vmem:[#allocation5 + $0x8] sm:$0xff]  ;;  %s359_s16 = smov [#allocation7]  }
  0x27   :  { %v50_v2 = vld [vmem:[#allocation5 + $0x10] sm:$0xff]  ;;  %v242_v3 = vpack.c.bf16 %v49_v1, %v48_v0  ;;  %v51_v4 = vld [vmem:[#allocation5 + $0x18] sm:$0xff]  ;;  %v52_v8 = vld [vmem:[#allocation5 + $0x20] sm:$0xff]  ;;  %s174_s17 = sshll.u32 %s359_s16, 4  ;;  %s175_s17 = int_to_ptr.vmem [resolvable:$true] %s174_s17 }
  0x28   :  { %v246_v5 = vpack.c.bf16 %v51_v4, %v50_v2  ;;  %v46_v6 = vld [vmem:[#allocation2] sm:$0xff]  ;;  %v47_v7 = vld [vmem:[#allocation2 + $0x8] sm:$0xff]  ;;  %v53_v9 = vld [vmem:[#allocation5 + $0x28] sm:$0xff]  ;;  %s327_s18 = scalar_lea.vmem %s175_s17, 256  ;;  %p332_p3 = scmp.lt.s32.totalorder %s175_s17, %s175_s17 }
  0x29   :  { %243 = vmatprep.subr.bf16.mxu0 %v242_v3  ;;  %v66_v10 = vmul.f32 %v46_v6, %v46_v6  ;;  %239 = vmatprep.mubr.f32.mxu0 %v46_v6  ;;  %v67_v11 = vmul.f32 %v47_v7, %v47_v7  ;;  %v187_v12 = vld [vmem:[%s438_s2] ss:$0 sm:$0xff]  ;;  %v250_v14 = vpack.c.bf16 %v53_v9, %v52_v8  ;;  %v55_v17 = vld [vmem:[#allocation5 + $0x38] sm:$0xff]  ;;  %v56_v19 = vld [vmem:[#allocation5 + $0x40] sm:$0xff]  ;;  %p328_p2 = scmp.ne.s32.totalorder %s175_s17, %s327_s18  ;;  %p333_p4 = scmp.lt.s32.totalorder %s327_s18, %s327_s18 }
  0x2a   :  { %245 = vmatpush3.bf16.xpose.msra.mxu0 %v242_v3  ;;  %v54_v16 = vld [vmem:[#allocation5 + $0x30] sm:$0xff]  ;;  %v57_v20 = vld [vmem:[#allocation5 + $0x48] sm:$0xff]  ;;  %v59_v23 = vld [vmem:[#allocation5 + $0x58] sm:$0xff] }
  0x2b   :  { %247 = vmatprep.subr.bf16.mxu0 %v246_v5  ;;  %v74_v13 = vmul.f32 %v187_v12, %v66_v10  ;;  %v75_v15 = vmul.f32 %v187_v12, %v67_v11  ;;  %v254_v18 = vpack.c.bf16 %v55_v17, %v54_v16  ;;  %v258_v21 = vpack.c.bf16 %v57_v20, %v56_v19  ;;  %v58_v22 = vld [vmem:[#allocation5 + $0x50] sm:$0xff]  ;;  %v60_v25 = vld [vmem:[#allocation5 + $0x60] sm:$0xff]  ;;  %v61_v26 = vld [vmem:[#allocation5 + $0x68] sm:$0xff]  ;;  %p334_p5 = por %p333_p4, %p332_p3 }
  0x2c   :  { %v262_v24 = vpack.c.bf16 %v59_v23, %v58_v22  ;;  %v266_v27 = vpack.c.bf16 %v61_v26, %v60_v25  ;;  %v62_v28 = vld [vmem:[#allocation5 + $0x70] sm:$0xff]  ;;  %v63_v29 = vld [vmem:[#allocation5 + $0x78] sm:$0xff] }
  0x2d   :  { %76 = vadd.xlane.f32.xlu0 %v74_v13  ;;  %v270_v30 = vpack.c.bf16 %v63_v29, %v62_v28  ;;  %v188_v34 = vld [vmem:[%s439_s3] ss:$0 sm:$0xff]  ;;  %p335_p6 = pnand %p334_p5, %p328_p2 }
  0x31   :  { %78 = vadd.xlane.f32.xlu0 %v75_v15 }
  0x32   :  { %249 = vmatpush3.bf16.xpose.msra.mxu0 %v246_v5 }
  0x33   :  { %251 = vmatprep.subr.bf16.mxu0 %v250_v14 }
  0x3a   :  { %253 = vmatpush3.bf16.xpose.msra.mxu0 %v250_v14 }
  0x3b   :  { %255 = vmatprep.subr.bf16.mxu0 %v254_v18 }
  0x42   :  { %257 = vmatpush3.bf16.xpose.msra.mxu0 %v254_v18 }
  0x43   :  { %259 = vmatprep.subr.bf16.mxu0 %v258_v21 }
  0x4a   :  { %261 = vmatpush3.bf16.xpose.msra.mxu0 %v258_v21 }
  0x4b   :  { %263 = vmatprep.subr.bf16.mxu0 %v262_v24 }
  0x52   :  { %265 = vmatpush3.bf16.xpose.msra.mxu0 %v262_v24 }
  0x53   :  { %267 = vmatprep.subr.bf16.mxu0 %v266_v27 }
  0x5a   :  { %269 = vmatpush3.bf16.xpose.msra.mxu0 %v266_v27 }
  0x5b   :  { %271 = vmatprep.subr.bf16.mxu0 %v270_v30 }
  0x62   :  { %273 = vmatpush3.bf16.xpose.msra.mxu0 %v270_v30 }
  0x69   :  { %240 = vmatmul.mubr.f32.vlgmr.msra.gmra.mrb[0].mxu0 %v47_v7 }
  0xba   :  { %v77_v31 = vpop.xlane.xlu0 %76 }
  0xbe   :  { %v79_v32 = vpop.xlane.xlu0 %78 }
 0x13c   :  { %v241_v33 = vpop.f32.mrb[0].mxu0 }
 0x13d   :  { %v152_v35 = vadd.f32 %v241_v33, %v79_v32  ;;  %v146_v36 = vpop.f32.mrb[1].mxu0 }
 0x13e   :  { %v147_v37 = vadd.f32 %v146_v36, %v77_v31 }
 0x13f   :  { %v162_v38 = vadd.f32 %v188_v34, %v152_v35 }
 0x140   :  { %v161_v39 = vadd.f32 %v188_v34, %v147_v37 }
 0x141   :  { %v165_v40 = vmul.f32 1.442695, %v162_v38 }
 0x142   :  { %v163_v41 = vmul.f32 1.442695, %v161_v39 }
 0x143   :  { %279 = vpow2.f32 %v165_v40 }
 0x144   :  { %281 = vpow2.f32 %v163_v41 }
 0x14d   :  { %v280_v42 = vpop.eup %279 }
 0x14e   :  { %v282_v43 = vpop.eup %281  ;;  %168 = vst [vmem:[#allocation7 + $0x8] sm:$0xff] %v280_v42 }
 0x14f   :  { %167 = vst [vmem:[#allocation7] sm:$0xff] %v282_v43 }
 0x150   :  { %338 = shalt.err (!%p335_p6)
}
 0x151   :  { %s339_s20 = scalar_lea.hbm %s440_s4, 256 }
 0x152   :  { %p340_p7 = scmp.ne.s32.totalorder %s440_s4, %s339_s20  ;;  %p343_p8 = scmp.lt.u32.totalorder %s339_s20, %s440_s4 }
 0x154   :  { %p345_p9 = pnand %p343_p8, %p340_p7 }
 0x156   :  { %348 = shalt.err (!%p345_p9)
}
 0x157   :  { %180 = dma.vmem_to_hbm [thread:$0]  %s175_s17, 256, %s440_s4, [#allocation4], %s356_s25, %s356_s25, %s357_s26  }
 0x158   :  { %353 = dma.done.wait [#allocation4], 256  }
 0x159   :  { %354 = vsyncadd [#allocation4], 4294967040 }
 0x15a   :  { %184 = vsyncpa [#allocation3], 1 }
 0x15b   :  { %185 = vsyncpa [#allocation6], 1 }
 0x15c   :  { %186 = vsyncpa [#allocation4], 1 }

</bundles_post_ra>
